<compile_context>
chip_gen: v6e
topology: v6e:2x2x1
jax: 0.10.0
libtpu: 0.0.40
codegen_flags: <defaults>
</compile_context>

<pallas_src>
import jax
import jax.numpy as jnp
from jax.experimental import pallas as pl
from jax.experimental.pallas import tpu as pltpu


def _round_up(x, m):
    return ((x + m - 1) // m) * m


# ---------------------------------------------------------------------------
# Fused kernel: conv stack + head, one batch row per grid step.
# Ref order: x, mask, [w_cat, b, gamma, beta] * n_layers, wout, bout,
#            wemb_col, bemb_col, lin_v_out, embed_out, hp_scratch.
# ---------------------------------------------------------------------------
def _make_fused_kernel(n_layers, K, T, Tpad, pad, lpad, use_im2col):

    def kernel(*refs):
        x_ref, m_ref = refs[0], refs[1]
        layer_refs = refs[2:2 + 4 * n_layers]
        wout_ref, bout_ref, wemb_ref, bemb_ref = refs[2 + 4 * n_layers:
                                                      6 + 4 * n_layers]
        linv_ref, emb_ref = refs[6 + 4 * n_layers:8 + 4 * n_layers]
        hp = refs[8 + 4 * n_layers]                 # (Tp, Cmax) bf16 scratch

        cmax = hp.shape[-1]
        # ---- zero ONLY the halo rows (left pad-alignment rows + right 'same'
        #      pad rows); data rows are rewritten below / each layer. ---------
        if lpad > 0:
            hp[0:lpad, :] = jnp.zeros((lpad, cmax), jnp.bfloat16)
        if pad > 0:
            hp[lpad + T:lpad + T + pad, :] = jnp.zeros((pad, cmax), jnp.bfloat16)

        # ---- load this batch row (already bf16) into the data rows ---------
        cin0 = x_ref.shape[-1]
        hp[lpad:lpad + T, :cin0] = x_ref[0]

        # ---- fused Conv1d('same') + ReLU + LayerNorm stack (resident VMEM) -
        h = None
        for l in range(n_layers):
            w_ref, b_ref, g_ref, beta_ref = layer_refs[4 * l:4 * l + 4]
            cout = w_ref.shape[-1]
            cin = w_ref.shape[0] // K
            if use_im2col[l]:
                # Small K*cin: one wide (T, K*cin) x (K*cin, cout) MXU matmul.
                # NOTE: shifted reads are sublane-misaligned (accepted; the
                # concat is only kept while K*cin <= MXU contraction width).
                xcat = jnp.concatenate(
                    [hp[lpad - pad + k:lpad - pad + k + T, :cin]
                     for k in range(K)], axis=-1)
                acc = jnp.dot(xcat, w_ref[...],
                              preferred_element_type=jnp.float32)
            else:
                # Wide layers: K accumulating dots on shifted views (no
                # (T, K*cin) slab materialisation; f32 accumulator).
                acc = None
                for k in range(K):
                    xk = hp[lpad - pad + k:lpad - pad + k + T, :cin]
                    wk = w_ref[k * cin:(k + 1) * cin, :]
                    part = jnp.dot(xk, wk, preferred_element_type=jnp.float32)
                    acc = part if acc is None else acc + part
            acc = acc + b_ref[...]
            acc = jnp.maximum(acc, 0.0)                      # ReLU
            mean = jnp.mean(acc, axis=-1, keepdims=True)     # LayerNorm (f32)
            var = jnp.mean(jnp.square(acc - mean), axis=-1, keepdims=True)
            h = (acc - mean) * jax.lax.rsqrt(var + 1e-5) * g_ref[...] + beta_ref[...]
            if l + 1 < n_layers:                             # bf16 write-back
                hp[lpad:lpad + T, :cout] = h.astype(jnp.bfloat16)

        # ---- head: mask * (h @ wout) + bout, exp(v)-1, 1x1 embedder --------
        # (T, 1) matvec in f32, then relayout only the length-T vector to a
        # lane-dense (1, T) row (no (T, C) transpose of h).
        v_col = jnp.dot(h, wout_ref[...], preferred_element_type=jnp.float32)
        v_row = jnp.transpose(v_col, (1, 0))                 # (1, T)
        if Tpad > T:
            v_row = jnp.concatenate(
                [v_row, jnp.zeros((1, Tpad - T), jnp.float32)], axis=-1)
        m_row = m_ref[0]                                     # (1, Tpad)
        v_row = v_row * m_row + bout_ref[...]
        linv_ref[0] = jnp.exp(v_row) - 1.0                   # lane-dense (1, Tpad)
        # embed emitted directly in (D, Tpad) layout (outer product + bias).
        emb = (wemb_ref[...] * v_row + bemb_ref[...]) * m_row
        emb_ref[0] = emb.astype(emb_ref.dtype)

    return kernel


# ---------------------------------------------------------------------------
# Wrapper
# ---------------------------------------------------------------------------
def variance_predictor_forward(x, x_mask, params, kernel_size, *,
                               im2col_max_width=256,
                               embed_dtype=jnp.float32):
    """x: (B, D, T) f32, x_mask: (B, 1, T) -> (lin_v (B, T), embed (B, D, T)).

    im2col_max_width: use the wide im2col matmul only while K*Cin is at or
      below this (MXU contraction width: 256 on v6e/v7x, 128 on v5e).
    """
    B, D, T = x.shape
    K = kernel_size
    assert K % 2 == 1, "only odd kernel_size supported (symmetric 'same' pad)"
    pad = (K - 1) // 2
    lpad = _round_up(pad, 16) if pad > 0 else 0   # bf16-tile aligned left halo
    layers = params["layers"]
    n_layers = len(layers)
    C = layers[-1][0].shape[-1]
    Cmax = max(D, max(w.shape[-1] for (w, _, _, _) in layers))
    Tp = lpad + T + pad
    Tpad = _round_up(T, 128)                      # lane-dense output stores

    xt = jnp.transpose(x, (0, 2, 1)).astype(jnp.bfloat16)    # (B, T, D)
    mask = x_mask.astype(jnp.float32)                        # (B, 1, T)
    if Tpad > T:
        mask = jnp.pad(mask, ((0, 0), (0, 0), (0, Tpad - T)))

    inputs = [xt, mask]
    in_specs = [
        pl.BlockSpec((1, T, D), lambda b: (b, 0, 0)),
        pl.BlockSpec((1, 1, Tpad), lambda b: (b, 0, 0)),
    ]
    use_im2col = []
    for (w, bb, g, be) in layers:
        Kw, cin, cout = w.shape
        use_im2col.append(Kw * cin <= im2col_max_width)
        # (K, Cin, Cout) -> (K*Cin, Cout); row-block k of this is exactly w[k],
        # so the same weight layout serves both conv paths.
        inputs += [w.reshape(Kw * cin, cout).astype(jnp.bfloat16), bb, g, be]
        in_specs += [
            pl.BlockSpec((Kw * cin, cout), lambda b: (0, 0)),
            pl.BlockSpec((1, cout), lambda b: (0, 0)),
            pl.BlockSpec((1, cout), lambda b: (0, 0)),
            pl.BlockSpec((1, cout), lambda b: (0, 0)),
        ]
    inputs += [params["wout"], params["bout"],
               params["wemb"].T, params["bemb"].T]
    in_specs += [
        pl.BlockSpec((C, 1), lambda b: (0, 0)),    # wout  (C, 1)
        pl.BlockSpec((1, 1), lambda b: (0, 0)),    # bout
        pl.BlockSpec((D, 1), lambda b: (0, 0)),    # wemb col (D, 1)
        pl.BlockSpec((D, 1), lambda b: (0, 0)),    # bemb col (D, 1)
    ]

    kernel = _make_fused_kernel(n_layers, K, T, Tpad, pad, lpad,
                                tuple(use_im2col))
    lin_v3, embed = pl.pallas_call(
        kernel,
        out_shape=(jax.ShapeDtypeStruct((B, 1, Tpad), jnp.float32),
                   jax.ShapeDtypeStruct((B, D, Tpad), embed_dtype)),
        grid=(B,),
        in_specs=in_specs,
        out_specs=(pl.BlockSpec((1, 1, Tpad), lambda b: (b, 0, 0)),
                   pl.BlockSpec((1, D, Tpad), lambda b: (b, 0, 0))),
        scratch_shapes=[pltpu.VMEM((Tp, Cmax), jnp.bfloat16)],
        compiler_params=pltpu.CompilerParams(
            dimension_semantics=("parallel",),
            vmem_limit_bytes=32 * 1024 * 1024),
    )(*inputs)
    # Padded tail of lin_v holds exp(bout)-1 (non-zero) — slice it away.
    lin_v = lin_v3.reshape(B, Tpad)[:, :T]
    embed = embed[:, :, :T]
    return lin_v, embed


# ---------------------------------------------------------------------------
# Parameter init (deterministic, synthetic)
# ---------------------------------------------------------------------------
def init_params(key, input_channels, n_channels, kernel_size, n_layers):
    params = {"layers": []}
    for i in range(n_layers):
        cin = input_channels if i == 0 else n_channels
        key, k1, k2 = jax.random.split(key, 3)
        w = jax.random.normal(k1, (kernel_size, cin, n_channels),
                              jnp.float32) / jnp.sqrt(float(cin * kernel_size))
        b = jax.random.normal(k2, (1, n_channels), jnp.float32) * 0.01
        g = jnp.ones((1, n_channels), jnp.float32)      # LayerNorm gamma
        be = jnp.zeros((1, n_channels), jnp.float32)    # LayerNorm beta
        params["layers"].append((w, b, g, be))
    key, k1, k2, k3, k4 = jax.random.split(key, 5)
    params["wout"] = jax.random.normal(k1, (n_channels, 1),
                                       jnp.float32) / jnp.sqrt(float(n_channels))
    params["bout"] = jax.random.normal(k2, (1, 1), jnp.float32) * 0.01
    params["wemb"] = jax.random.normal(k3, (1, input_channels), jnp.float32) * 0.5
    params["bemb"] = jax.random.normal(k4, (1, input_channels), jnp.float32) * 0.01
    return params


# ---------------------------------------------------------------------------
# Pure-JAX f32 reference (for sanity checking)
# ---------------------------------------------------------------------------
def ref_forward(x, x_mask, params, kernel_size):
    B, D, T = x.shape
    pad = (kernel_size - 1) // 2
    h = jnp.transpose(x, (0, 2, 1))
    for (w, b, g, be) in params["layers"]:
        hp = jnp.pad(h, ((0, 0), (pad, pad), (0, 0)))
        acc = sum(jnp.einsum('btc,cd->btd', hp[:, k:k + T, :], w[k])
                  for k in range(kernel_size)) + b
        acc = jnp.maximum(acc, 0.0)
        mean = acc.mean(-1, keepdims=True)
        var = ((acc - mean) ** 2).mean(-1, keepdims=True)
        h = (acc - mean) / jnp.sqrt(var + 1e-5) * g + be
    m = jnp.transpose(x_mask, (0, 2, 1))
    v = (h * m) @ params["wout"] + params["bout"][0, 0]
    lin_v = jnp.exp(v)[..., 0] - 1.0
    emb = (v * params["wemb"] + params["bemb"]) * m
    return lin_v, jnp.transpose(emb, (0, 2, 1))


if __name__ == "__main__":
    B, D, T = 2, 32, 16            # input_channels = D
    n_channels, kernel_size, n_layers = 32, 3, 2

    key = jax.random.PRNGKey(0)
    kp, kx = jax.random.split(key)
    params = init_params(kp, D, n_channels, kernel_size, n_layers)

    x = jax.random.normal(kx, (B, D, T), jnp.float32)
    lengths = jnp.array([T, 10])
    x_mask = (jnp.arange(T)[None, :] < lengths[:, None]).astype(jnp.float32)
    x_mask = x_mask.reshape(B, 1, T)

    lin_v_ref, embed_ref = ref_forward(x, x_mask, params, kernel_size)

    # Path 1 (default): wide im2col matmul (K*Cin small enough here).
    lin_v, embed = variance_predictor_forward(x, x_mask, params, kernel_size)
    jax.block_until_ready((lin_v, embed))
    assert lin_v.shape == (B, T) and embed.shape == (B, D, T)
    # bf16 conv operands + bf16 inter-layer activations; exp() amplifies the
    # relative error of v -> looser tolerance on lin_v than on embed.
    assert jnp.allclose(lin_v, lin_v_ref, rtol=5e-2, atol=5e-2)
    assert jnp.allclose(embed, embed_ref, rtol=3e-2, atol=3e-2)

    # Path 2: force the K-accumulating-dot conv path (used for wide layers
    # where K*Cin exceeds the MXU contraction width on real channel counts).
    lin_v2, embed2 = variance_predictor_forward(x, x_mask, params, kernel_size,
                                                im2col_max_width=0)
    jax.block_until_ready((lin_v2, embed2))
    assert jnp.allclose(lin_v2, lin_v_ref, rtol=5e-2, atol=5e-2)
    assert jnp.allclose(embed2, embed_ref, rtol=3e-2, atol=3e-2)

    print("KERNEL_OK")
</pallas_src>

<mosaic_0001>
module attributes {stable_mosaic.version = 11 : i64} {
  func.func @kernel(%arg0: i32, %arg1: memref<1x16x32xbf16, #tpu.memory_space<vmem>>, %arg2: memref<1x1x128xf32, #tpu.memory_space<vmem>>, %arg3: memref<96x32xbf16, #tpu.memory_space<vmem>>, %arg4: memref<1x32xf32, #tpu.memory_space<vmem>>, %arg5: memref<1x32xf32, #tpu.memory_space<vmem>>, %arg6: memref<1x32xf32, #tpu.memory_space<vmem>>, %arg7: memref<96x32xbf16, #tpu.memory_space<vmem>>, %arg8: memref<1x32xf32, #tpu.memory_space<vmem>>, %arg9: memref<1x32xf32, #tpu.memory_space<vmem>>, %arg10: memref<1x32xf32, #tpu.memory_space<vmem>>, %arg11: memref<32x1xf32, #tpu.memory_space<vmem>>, %arg12: memref<1x1xf32, #tpu.memory_space<vmem>>, %arg13: memref<32x1xf32, #tpu.memory_space<vmem>>, %arg14: memref<32x1xf32, #tpu.memory_space<vmem>>, %arg15: memref<1x1x128xf32, #tpu.memory_space<vmem>>, %arg16: memref<1x32x128xf32, #tpu.memory_space<vmem>>, %arg17: memref<33x32xbf16, #tpu.memory_space<vmem>>) attributes {dimension_semantics = [#tpu.dimension_semantics<parallel>], iteration_bounds = array<i64: 2>, scalar_prefetch = 0 : i64, scratch_operands = 1 : i64, tpu.core_type = #tpu.core_type<tc>, window_params = [{transform_indices = @transform_0, window_bounds = array<i64: 1, 16, 32>}, {transform_indices = @transform_1, window_bounds = array<i64: 1, 1, 128>}, {pipeline_mode = #tpu.pipeline_mode<synchronous>, transform_indices = @transform_2, window_bounds = array<i64: 96, 32>}, {pipeline_mode = #tpu.pipeline_mode<synchronous>, transform_indices = @transform_3, window_bounds = array<i64: 1, 32>}, {pipeline_mode = #tpu.pipeline_mode<synchronous>, transform_indices = @transform_4, window_bounds = array<i64: 1, 32>}, {pipeline_mode = #tpu.pipeline_mode<synchronous>, transform_indices = @transform_5, window_bounds = array<i64: 1, 32>}, {pipeline_mode = #tpu.pipeline_mode<synchronous>, transform_indices = @transform_6, window_bounds = array<i64: 96, 32>}, {pipeline_mode = #tpu.pipeline_mode<synchronous>, transform_indices = @transform_7, window_bounds = array<i64: 1, 32>}, {pipeline_mode = #tpu.pipeline_mode<synchronous>, transform_indices = @transform_8, window_bounds = array<i64: 1, 32>}, {pipeline_mode = #tpu.pipeline_mode<synchronous>, transform_indices = @transform_9, window_bounds = array<i64: 1, 32>}, {pipeline_mode = #tpu.pipeline_mode<synchronous>, transform_indices = @transform_10, window_bounds = array<i64: 32, 1>}, {pipeline_mode = #tpu.pipeline_mode<synchronous>, transform_indices = @transform_11, window_bounds = array<i64: 1, 1>}, {pipeline_mode = #tpu.pipeline_mode<synchronous>, transform_indices = @transform_12, window_bounds = array<i64: 32, 1>}, {pipeline_mode = #tpu.pipeline_mode<synchronous>, transform_indices = @transform_13, window_bounds = array<i64: 32, 1>}, {transform_indices = @transform_14, window_bounds = array<i64: 1, 1, 128>}, {transform_indices = @transform_15, window_bounds = array<i64: 1, 32, 128>}]} {
    %cst = arith.constant 0.000000e+00 : bf16
    %0 = vector.broadcast %cst : bf16 to vector<16x32xbf16>
    %c0 = arith.constant 0 : index
    %c0_0 = arith.constant 0 : index
    %1 = vector.load %arg17[%c0, %c0_0] : memref<33x32xbf16, #tpu.memory_space<vmem>>, vector<16x32xbf16>
    tpu.vector_store %arg17[%c0, %c0_0], %0 {strides = array<i32>} : memref<33x32xbf16, #tpu.memory_space<vmem>>, vector<16x32xbf16>,
    %cst_1 = arith.constant 0.000000e+00 : bf16
    %2 = vector.broadcast %cst_1 : bf16 to vector<1x32xbf16>
    %c32 = arith.constant 32 : index
    %c0_2 = arith.constant 0 : index
    %3 = vector.load %arg17[%c32, %c0_2] : memref<33x32xbf16, #tpu.memory_space<vmem>>, vector<1x32xbf16>
    tpu.vector_store %arg17[%c32, %c0_2], %2 {strides = array<i32>} : memref<33x32xbf16, #tpu.memory_space<vmem>>, vector<1x32xbf16>,
    %c0_3 = arith.constant 0 : index
    %c0_4 = arith.constant 0 : index
    %c0_5 = arith.constant 0 : index
    %4 = vector.load %arg1[%c0_3, %c0_4, %c0_5] : memref<1x16x32xbf16, #tpu.memory_space<vmem>>, vector<1x16x32xbf16>
    %5 = vector.shape_cast %4 : vector<1x16x32xbf16> to vector<16x32xbf16>
    %c16 = arith.constant 16 : index
    %c0_6 = arith.constant 0 : index
    %6 = vector.load %arg17[%c16, %c0_6] : memref<33x32xbf16, #tpu.memory_space<vmem>>, vector<16x32xbf16>
    tpu.vector_store %arg17[%c16, %c0_6], %5 {strides = array<i32>} : memref<33x32xbf16, #tpu.memory_space<vmem>>, vector<16x32xbf16>,
    %c15 = arith.constant 15 : index
    %c0_7 = arith.constant 0 : index
    %7 = vector.load %arg17[%c15, %c0_7] : memref<33x32xbf16, #tpu.memory_space<vmem>>, vector<16x32xbf16>
    %c16_8 = arith.constant 16 : index
    %c0_9 = arith.constant 0 : index
    %8 = vector.load %arg17[%c16_8, %c0_9] : memref<33x32xbf16, #tpu.memory_space<vmem>>, vector<16x32xbf16>
    %c17 = arith.constant 17 : index
    %c0_10 = arith.constant 0 : index
    %9 = vector.load %arg17[%c17, %c0_10] : memref<33x32xbf16, #tpu.memory_space<vmem>>, vector<16x32xbf16>
    %10 = tpu.concatenate %7, %8, %9 in 1 : vector<16x32xbf16>, vector<16x32xbf16>, vector<16x32xbf16> -> vector<16x96xbf16>
    %c0_11 = arith.constant 0 : index
    %c0_12 = arith.constant 0 : index
    %11 = vector.load %arg3[%c0_11, %c0_12] : memref<96x32xbf16, #tpu.memory_space<vmem>>, vector<96x32xbf16>
    %cst_13 = arith.constant dense<0.000000e+00> : vector<16x32xf32>
    %12 = tpu.matmul %10, %11, %cst_13 {dimension_numbers = #tpu.dot_dimension_numbers<[1], [0], [0], [1], [0, 0, 1, 1], [], []>} : vector<16x96xbf16>, vector<96x32xbf16>, vector<16x32xf32> -> vector<16x32xf32>
    %c0_14 = arith.constant 0 : index
    %c0_15 = arith.constant 0 : index
    %13 = vector.load %arg4[%c0_14, %c0_15] : memref<1x32xf32, #tpu.memory_space<vmem>>, vector<1x32xf32>
    %14 = vector.broadcast %13 : vector<1x32xf32> to vector<16x32xf32>
    %15 = arith.addf %12, %14 : vector<16x32xf32>
    %cst_16 = arith.constant 0.000000e+00 : f32
    %16 = vector.broadcast %cst_16 : f32 to vector<16x32xf32>
    %17 = arith.maximumf %15, %16 : vector<16x32xf32>
    %cst_17 = arith.constant dense<0.000000e+00> : vector<16xf32>
    %18 = vector.multi_reduction <add>, %17, %cst_17 [1] : vector<16x32xf32> to vector<16xf32>
    %19 = vector.shape_cast %18 : vector<16xf32> to vector<16x1xf32>
    %cst_18 = arith.constant 3.200000e+01 : f32
    %20 = vector.broadcast %cst_18 : f32 to vector<16x1xf32>
    %21 = arith.divf %19, %20 : vector<16x1xf32>
    %22 = vector.broadcast %21 : vector<16x1xf32> to vector<16x32xf32>
    %23 = arith.subf %17, %22 : vector<16x32xf32>
    %24 = arith.mulf %23, %23 : vector<16x32xf32>
    %cst_19 = arith.constant dense<0.000000e+00> : vector<16xf32>
    %25 = vector.multi_reduction <add>, %24, %cst_19 [1] : vector<16x32xf32> to vector<16xf32>
    %26 = vector.shape_cast %25 : vector<16xf32> to vector<16x1xf32>
    %cst_20 = arith.constant 3.200000e+01 : f32
    %27 = vector.broadcast %cst_20 : f32 to vector<16x1xf32>
    %28 = arith.divf %26, %27 : vector<16x1xf32>
    %29 = vector.broadcast %21 : vector<16x1xf32> to vector<16x32xf32>
    %30 = arith.subf %17, %29 : vector<16x32xf32>
    %cst_21 = arith.constant 9.99999974E-6 : f32
    %31 = vector.broadcast %cst_21 : f32 to vector<16x1xf32>
    %32 = arith.addf %28, %31 : vector<16x1xf32>
    %33 = math.rsqrt %32 : vector<16x1xf32>
    %34 = vector.broadcast %33 : vector<16x1xf32> to vector<16x32xf32>
    %35 = arith.mulf %30, %34 : vector<16x32xf32>
    %c0_22 = arith.constant 0 : index
    %c0_23 = arith.constant 0 : index
    %36 = vector.load %arg5[%c0_22, %c0_23] : memref<1x32xf32, #tpu.memory_space<vmem>>, vector<1x32xf32>
    %37 = vector.broadcast %36 : vector<1x32xf32> to vector<16x32xf32>
    %38 = arith.mulf %35, %37 : vector<16x32xf32>
    %c0_24 = arith.constant 0 : index
    %c0_25 = arith.constant 0 : index
    %39 = vector.load %arg6[%c0_24, %c0_25] : memref<1x32xf32, #tpu.memory_space<vmem>>, vector<1x32xf32>
    %40 = vector.broadcast %39 : vector<1x32xf32> to vector<16x32xf32>
    %41 = arith.addf %38, %40 : vector<16x32xf32>
    %42 = arith.truncf %41 : vector<16x32xf32> to vector<16x32xbf16>
    %c16_26 = arith.constant 16 : index
    %c0_27 = arith.constant 0 : index
    %43 = vector.load %arg17[%c16_26, %c0_27] : memref<33x32xbf16, #tpu.memory_space<vmem>>, vector<16x32xbf16>
    tpu.vector_store %arg17[%c16_26, %c0_27], %42 {strides = array<i32>} : memref<33x32xbf16, #tpu.memory_space<vmem>>, vector<16x32xbf16>,
    %c15_28 = arith.constant 15 : index
    %c0_29 = arith.constant 0 : index
    %44 = vector.load %arg17[%c15_28, %c0_29] : memref<33x32xbf16, #tpu.memory_space<vmem>>, vector<16x32xbf16>
    %c16_30 = arith.constant 16 : index
    %c0_31 = arith.constant 0 : index
    %45 = vector.load %arg17[%c16_30, %c0_31] : memref<33x32xbf16, #tpu.memory_space<vmem>>, vector<16x32xbf16>
    %c17_32 = arith.constant 17 : index
    %c0_33 = arith.constant 0 : index
    %46 = vector.load %arg17[%c17_32, %c0_33] : memref<33x32xbf16, #tpu.memory_space<vmem>>, vector<16x32xbf16>
    %47 = tpu.concatenate %44, %45, %46 in 1 : vector<16x32xbf16>, vector<16x32xbf16>, vector<16x32xbf16> -> vector<16x96xbf16>
    %c0_34 = arith.constant 0 : index
    %c0_35 = arith.constant 0 : index
    %48 = vector.load %arg7[%c0_34, %c0_35] : memref<96x32xbf16, #tpu.memory_space<vmem>>, vector<96x32xbf16>
    %cst_36 = arith.constant dense<0.000000e+00> : vector<16x32xf32>
    %49 = tpu.matmul %47, %48, %cst_36 {dimension_numbers = #tpu.dot_dimension_numbers<[1], [0], [0], [1], [0, 0, 1, 1], [], []>} : vector<16x96xbf16>, vector<96x32xbf16>, vector<16x32xf32> -> vector<16x32xf32>
    %c0_37 = arith.constant 0 : index
    %c0_38 = arith.constant 0 : index
    %50 = vector.load %arg8[%c0_37, %c0_38] : memref<1x32xf32, #tpu.memory_space<vmem>>, vector<1x32xf32>
    %51 = vector.broadcast %50 : vector<1x32xf32> to vector<16x32xf32>
    %52 = arith.addf %49, %51 : vector<16x32xf32>
    %cst_39 = arith.constant 0.000000e+00 : f32
    %53 = vector.broadcast %cst_39 : f32 to vector<16x32xf32>
    %54 = arith.maximumf %52, %53 : vector<16x32xf32>
    %cst_40 = arith.constant dense<0.000000e+00> : vector<16xf32>
    %55 = vector.multi_reduction <add>, %54, %cst_40 [1] : vector<16x32xf32> to vector<16xf32>
    %56 = vector.shape_cast %55 : vector<16xf32> to vector<16x1xf32>
    %cst_41 = arith.constant 3.200000e+01 : f32
    %57 = vector.broadcast %cst_41 : f32 to vector<16x1xf32>
    %58 = arith.divf %56, %57 : vector<16x1xf32>
    %59 = vector.broadcast %58 : vector<16x1xf32> to vector<16x32xf32>
    %60 = arith.subf %54, %59 : vector<16x32xf32>
    %61 = arith.mulf %60, %60 : vector<16x32xf32>
    %cst_42 = arith.constant dense<0.000000e+00> : vector<16xf32>
    %62 = vector.multi_reduction <add>, %61, %cst_42 [1] : vector<16x32xf32> to vector<16xf32>
    %63 = vector.shape_cast %62 : vector<16xf32> to vector<16x1xf32>
    %cst_43 = arith.constant 3.200000e+01 : f32
    %64 = vector.broadcast %cst_43 : f32 to vector<16x1xf32>
    %65 = arith.divf %63, %64 : vector<16x1xf32>
    %66 = vector.broadcast %58 : vector<16x1xf32> to vector<16x32xf32>
    %67 = arith.subf %54, %66 : vector<16x32xf32>
    %cst_44 = arith.constant 9.99999974E-6 : f32
    %68 = vector.broadcast %cst_44 : f32 to vector<16x1xf32>
    %69 = arith.addf %65, %68 : vector<16x1xf32>
    %70 = math.rsqrt %69 : vector<16x1xf32>
    %71 = vector.broadcast %70 : vector<16x1xf32> to vector<16x32xf32>
    %72 = arith.mulf %67, %71 : vector<16x32xf32>
    %c0_45 = arith.constant 0 : index
    %c0_46 = arith.constant 0 : index
    %73 = vector.load %arg9[%c0_45, %c0_46] : memref<1x32xf32, #tpu.memory_space<vmem>>, vector<1x32xf32>
    %74 = vector.broadcast %73 : vector<1x32xf32> to vector<16x32xf32>
    %75 = arith.mulf %72, %74 : vector<16x32xf32>
    %c0_47 = arith.constant 0 : index
    %c0_48 = arith.constant 0 : index
    %76 = vector.load %arg10[%c0_47, %c0_48] : memref<1x32xf32, #tpu.memory_space<vmem>>, vector<1x32xf32>
    %77 = vector.broadcast %76 : vector<1x32xf32> to vector<16x32xf32>
    %78 = arith.addf %75, %77 : vector<16x32xf32>
    %c0_49 = arith.constant 0 : index
    %c0_50 = arith.constant 0 : index
    %79 = vector.load %arg11[%c0_49, %c0_50] : memref<32x1xf32, #tpu.memory_space<vmem>>, vector<32x1xf32>
    %cst_51 = arith.constant dense<0.000000e+00> : vector<16x1xf32>
    %80 = tpu.matmul %78, %79, %cst_51 {dimension_numbers = #tpu.dot_dimension_numbers<[1], [0], [0], [1], [0, 0, 1, 1], [], []>} : vector<16x32xf32>, vector<32x1xf32>, vector<16x1xf32> -> vector<16x1xf32>
    %81 = tpu.transpose %80, [1, 0] : vector<16x1xf32> -> vector<1x16xf32>
    %cst_52 = arith.constant 0.000000e+00 : f32
    %82 = vector.broadcast %cst_52 : f32 to vector<1x112xf32>
    %83 = tpu.concatenate %81, %82 in 1 : vector<1x16xf32>, vector<1x112xf32> -> vector<1x128xf32>
    %c0_53 = arith.constant 0 : index
    %c0_54 = arith.constant 0 : index
    %c0_55 = arith.constant 0 : index
    %84 = vector.load %arg2[%c0_53, %c0_54, %c0_55] : memref<1x1x128xf32, #tpu.memory_space<vmem>>, vector<1x1x128xf32>
    %85 = vector.shape_cast %84 : vector<1x1x128xf32> to vector<1x128xf32>
    %86 = arith.mulf %83, %85 : vector<1x128xf32>
    %c0_56 = arith.constant 0 : index
    %c0_57 = arith.constant 0 : index
    %87 = vector.load %arg12[%c0_56, %c0_57] : memref<1x1xf32, #tpu.memory_space<vmem>>, vector<1x1xf32>
    %88 = vector.broadcast %87 : vector<1x1xf32> to vector<1x128xf32>
    %89 = arith.addf %86, %88 : vector<1x128xf32>
    %90 = math.exp %89 : vector<1x128xf32>
    %cst_58 = arith.constant 1.000000e+00 : f32
    %91 = vector.broadcast %cst_58 : f32 to vector<1x128xf32>
    %92 = arith.subf %90, %91 : vector<1x128xf32>
    %c0_59 = arith.constant 0 : index
    %c0_60 = arith.constant 0 : index
    %c0_61 = arith.constant 0 : index
    %93 = vector.load %arg15[%c0_59, %c0_60, %c0_61] : memref<1x1x128xf32, #tpu.memory_space<vmem>>, vector<1x1x128xf32>
    %94 = vector.shape_cast %93 : vector<1x1x128xf32> to vector<1x128xf32>
    %95 = vector.shape_cast %92 : vector<1x128xf32> to vector<1x1x128xf32>
    tpu.vector_store %arg15[%c0_59, %c0_60, %c0_61], %95 {strides = array<i32>} : memref<1x1x128xf32, #tpu.memory_space<vmem>>, vector<1x1x128xf32>,
    %c0_62 = arith.constant 0 : index
    %c0_63 = arith.constant 0 : index
    %96 = vector.load %arg13[%c0_62, %c0_63] : memref<32x1xf32, #tpu.memory_space<vmem>>, vector<32x1xf32>
    %97 = vector.broadcast %96 : vector<32x1xf32> to vector<32x128xf32>
    %98 = vector.broadcast %89 : vector<1x128xf32> to vector<32x128xf32>
    %99 = arith.mulf %97, %98 : vector<32x128xf32>
    %c0_64 = arith.constant 0 : index
    %c0_65 = arith.constant 0 : index
    %100 = vector.load %arg14[%c0_64, %c0_65] : memref<32x1xf32, #tpu.memory_space<vmem>>, vector<32x1xf32>
    %101 = vector.broadcast %100 : vector<32x1xf32> to vector<32x128xf32>
    %102 = arith.addf %99, %101 : vector<32x128xf32>
    %103 = vector.broadcast %85 : vector<1x128xf32> to vector<32x128xf32>
    %104 = arith.mulf %102, %103 : vector<32x128xf32>
    %c0_66 = arith.constant 0 : index
    %c0_67 = arith.constant 0 : index
    %c0_68 = arith.constant 0 : index
    %105 = vector.load %arg16[%c0_66, %c0_67, %c0_68] : memref<1x32x128xf32, #tpu.memory_space<vmem>>, vector<1x32x128xf32>
    %106 = vector.shape_cast %105 : vector<1x32x128xf32> to vector<32x128xf32>
    %107 = vector.shape_cast %104 : vector<32x128xf32> to vector<1x32x128xf32>
    tpu.vector_store %arg16[%c0_66, %c0_67, %c0_68], %107 {strides = array<i32>} : memref<1x32x128xf32, #tpu.memory_space<vmem>>, vector<1x32x128xf32>,
    return
  }
  func.func @transform_0(%arg0: i32) -> (i32, i32, i32) {
    %c0_i32 = arith.constant 0 : i32
    %c0_i32_0 = arith.constant 0 : i32
    %c0_i32_1 = arith.constant 0 : i32
    return %arg0, %c0_i32, %c0_i32_0 : i32, i32, i32
  }
  func.func @transform_1(%arg0: i32) -> (i32, i32, i32) {
    %c0_i32 = arith.constant 0 : i32
    %c0_i32_0 = arith.constant 0 : i32
    %c0_i32_1 = arith.constant 0 : i32
    return %arg0, %c0_i32, %c0_i32_0 : i32, i32, i32
  }
  func.func @transform_2(%arg0: i32) -> (i32, i32) {
    %c0_i32 = arith.constant 0 : i32
    %c0_i32_0 = arith.constant 0 : i32
    %c0_i32_1 = arith.constant 0 : i32
    return %c0_i32, %c0_i32_0 : i32, i32
  }
  func.func @transform_3(%arg0: i32) -> (i32, i32) {
    %c0_i32 = arith.constant 0 : i32
    %c0_i32_0 = arith.constant 0 : i32
    %c0_i32_1 = arith.constant 0 : i32
    return %c0_i32, %c0_i32_0 : i32, i32
  }
  func.func @transform_4(%arg0: i32) -> (i32, i32) {
    %c0_i32 = arith.constant 0 : i32
    %c0_i32_0 = arith.constant 0 : i32
    %c0_i32_1 = arith.constant 0 : i32
    return %c0_i32, %c0_i32_0 : i32, i32
  }
  func.func @transform_5(%arg0: i32) -> (i32, i32) {
    %c0_i32 = arith.constant 0 : i32
    %c0_i32_0 = arith.constant 0 : i32
    %c0_i32_1 = arith.constant 0 : i32
    return %c0_i32, %c0_i32_0 : i32, i32
  }
  func.func @transform_6(%arg0: i32) -> (i32, i32) {
    %c0_i32 = arith.constant 0 : i32
    %c0_i32_0 = arith.constant 0 : i32
    %c0_i32_1 = arith.constant 0 : i32
    return %c0_i32, %c0_i32_0 : i32, i32
  }
  func.func @transform_7(%arg0: i32) -> (i32, i32) {
    %c0_i32 = arith.constant 0 : i32
    %c0_i32_0 = arith.constant 0 : i32
    %c0_i32_1 = arith.constant 0 : i32
    return %c0_i32, %c0_i32_0 : i32, i32
  }
  func.func @transform_8(%arg0: i32) -> (i32, i32) {
    %c0_i32 = arith.constant 0 : i32
    %c0_i32_0 = arith.constant 0 : i32
    %c0_i32_1 = arith.constant 0 : i32
    return %c0_i32, %c0_i32_0 : i32, i32
  }
  func.func @transform_9(%arg0: i32) -> (i32, i32) {
    %c0_i32 = arith.constant 0 : i32
    %c0_i32_0 = arith.constant 0 : i32
    %c0_i32_1 = arith.constant 0 : i32
    return %c0_i32, %c0_i32_0 : i32, i32
  }
  func.func @transform_10(%arg0: i32) -> (i32, i32) {
    %c0_i32 = arith.constant 0 : i32
    %c0_i32_0 = arith.constant 0 : i32
    %c0_i32_1 = arith.constant 0 : i32
    return %c0_i32, %c0_i32_0 : i32, i32
  }
  func.func @transform_11(%arg0: i32) -> (i32, i32) {
    %c0_i32 = arith.constant 0 : i32
    %c0_i32_0 = arith.constant 0 : i32
    %c0_i32_1 = arith.constant 0 : i32
    return %c0_i32, %c0_i32_0 : i32, i32
  }
  func.func @transform_12(%arg0: i32) -> (i32, i32) {
    %c0_i32 = arith.constant 0 : i32
    %c0_i32_0 = arith.constant 0 : i32
    %c0_i32_1 = arith.constant 0 : i32
    return %c0_i32, %c0_i32_0 : i32, i32
  }
  func.func @transform_13(%arg0: i32) -> (i32, i32) {
    %c0_i32 = arith.constant 0 : i32
    %c0_i32_0 = arith.constant 0 : i32
    %c0_i32_1 = arith.constant 0 : i32
    return %c0_i32, %c0_i32_0 : i32, i32
  }
  func.func @transform_14(%arg0: i32) -> (i32, i32, i32) {
    %c0_i32 = arith.constant 0 : i32
    %c0_i32_0 = arith.constant 0 : i32
    %c0_i32_1 = arith.constant 0 : i32
    return %arg0, %c0_i32, %c0_i32_0 : i32, i32, i32
  }
  func.func @transform_15(%arg0: i32) -> (i32, i32, i32) {
    %c0_i32 = arith.constant 0 : i32
    %c0_i32_0 = arith.constant 0 : i32
    %c0_i32_1 = arith.constant 0 : i32
    return %arg0, %c0_i32, %c0_i32_0 : i32, i32, i32
  }
}

</mosaic_0001>

<bundles_post_ra>
// kernel: tpu_custom_call.1
= control target key start
LH: loop header
LB: loop body
LE: loop exit
PB: predicated region body
PF: predicated region fallthrough
CT: control target
= control target key end

     0   :  { %s1940_s0 = inlined_call_operand.vmem [shape: bf16[2,16,32], index: 0, kind: input, shape index: {}]   ;;  %s1941_s1 = inlined_call_operand.vmem [shape: f32[2,1,128], index: 1, kind: input, shape index: {}]   ;;  %s1942_s2 = inlined_call_operand.vmem [shape: bf16[96,32], index: 2, kind: input, shape index: {}]   ;;  %s1943_s3 = inlined_call_operand.vmem [shape: f32[1,32], index: 3, kind: input, shape index: {}]   ;;  %s1944_s4 = inlined_call_operand.vmem [shape: f32[1,32], index: 4, kind: input, shape index: {}]   ;;  %s1945_s5 = inlined_call_operand.vmem [shape: f32[1,32], index: 5, kind: input, shape index: {}]   ;;  %s1946_s6 = inlined_call_operand.vmem [shape: bf16[96,32], index: 6, kind: input, shape index: {}]   ;;  %s1947_s7 = inlined_call_operand.vmem [shape: f32[1,32], index: 7, kind: input, shape index: {}]   ;;  %s1948_s8 = inlined_call_operand.vmem [shape: f32[1,32], index: 8, kind: input, shape index: {}]   ;;  %s1949_s9 = inlined_call_operand.vmem [shape: f32[1,32], index: 9, kind: input, shape index: {}]   ;;  %s1950_s10 = inlined_call_operand.vmem [shape: f32[32,1], index: 10, kind: input, shape index: {}]   ;;  %s1951_s11 = inlined_call_operand.<no memory space> [shape: f32[1,1], index: 11, kind: input, shape index: {}]   ;;  %s1952_s12 = inlined_call_operand.vmem [shape: f32[32,1], index: 12, kind: input, shape index: {}]   ;;  %s1953_s13 = inlined_call_operand.vmem [shape: f32[32,1], index: 13, kind: input, shape index: {}]   ;;  %s1954_s14 = inlined_call_operand.hbm [shape: f32[2,1,128], index: 14, kind: output, shape index: {0}]   ;;  %s1955_s15 = inlined_call_operand.hbm [shape: f32[2,32,128], index: 15, kind: output, shape index: {1}]  }
   0x1   :  { %1957 = sst [smem:[#allocation12_spill]] %s1940_s0  ;;  %v21_v0 = vstv %s1951_s11 }
   0x2   :  { %1958 = sst [smem:[#allocation13_spill]] %s1941_s1  ;;  %22 = vst [vmem:[#allocation3] sm:$0x1] %v21_v0 }
   0x3   :  { %1959 = sst [smem:[#allocation14_spill]] %s1942_s2 }
   0x4   :  { %1960 = sst [smem:[#allocation15_spill]] %s1943_s3 }
   0x5   :  { %1961 = sst [smem:[#allocation16_spill]] %s1944_s4 }
   0x6   :  { %1962 = sst [smem:[#allocation17_spill]] %s1945_s5 }
   0x7   :  { %1963 = sst [smem:[#allocation18_spill]] %s1946_s6 }
   0x8   :  { %23 = vsyncpa [#allocation5], 0 }
   0x9   :  { %25 = vsyncpa [#allocation5 + $0x1], 0 }
   0xa   :  { %26 = vsyncpa [#allocation7], 0 }
   0xb   :  { %28 = vsyncpa [#allocation7 + $0x1], 0  ;;  %s1671_s20 = smov 0   ;;  %s1673_s21 = smov 0  }
   0xc   :  { %s1675_s22 = smov 0   ;;  %s1677_s23 = smov 0  }
   0xd LB: > { %1964 = sst [smem:[#allocation10_spill]] %s1573_s22  ;;  %s1692_s11 = sadd.s32 4294967295, %s1577_s23   ;;  %s1577_s23 = sphi %s1677_s23, %s1980_s23   ;;  %s1573_s22 = sphi %s1675_s22, %s1977_s22   ;;  %s1569_s21 = sphi %s1673_s21, %s1979_s21   ;;  %s1565_s20 = sphi %s1671_s20, %s1978_s20  }
   0xe   : > { %s1293_s24 = sadd.s32 4294967294, %s1577_s23   ;;  %s1696_s25 = sadd.s32 1, %s1577_s23  }
   0xf   : > { %s345_s26 = sadd.s32 1, %s1573_s22  ;;  %s342_s27 = ssub.s32 %s1577_s23, %s1696_s25 }
  0x10   : > { %p355_p0 = scmp.ne.s32.totalorder %s1573_s22, %s1569_s21  ;;  %p343_p1 = scmp.eq.s32.totalorder %s342_s27, 0 }
  0x11   : > { %p356_p2 = scmp.eq.s32.totalorder %s1692_s11, 1  ;;  %p361_p3 = scmp.ne.s32.totalorder %s1569_s21, %s1565_s20 }
  0x12   : > { %p362_p4 = scmp.eq.s32.totalorder %s1293_s24, 1  ;;  %p1296_p7 = scmp.ge.s32.totalorder %s1577_s23, 1 }
  0x13   : > { %s1707_s28 = scalar_select %p343_p1, %s1573_s22, %s345_s26  }
  0x14   : > { %p1709_p5 = por %p356_p2, %p355_p0  ;;  %p1713_p6 = por %p362_p4, %p361_p3 }
  0x15   : > { %1965 = sst [smem:[#allocation11_spill]] %s1707_s28  ;;  %p456_p8 = scmp.lt.s32.totalorder %s1577_s23, 3 }
  0x17   : > { %p457_p9 = pnand %p1296_p7, %p456_p8 }
  0x18   : > { %p511_p10 = scmp.lt.s32.totalorder (!%p457_p9), %s1692_s11, 1  ;;  %s1968_s2 = sld [smem:[#allocation14_spill]] (!%p457_p9) }
  0x19   : > { %460 = sbr.rel (%p457_p9) target bundleno = 1711 (0x6af), region = 76  ;;  %s1969_s0 = sld [smem:[#allocation12_spill]] (!%p457_p9) }
  0x1a   : > { %s1581_s16 = smov (!%p457_p9), 64   ;;  %s1970_s3 = sld [smem:[#allocation15_spill]] (!%p457_p9) }
  0x1b   : > { %s1971_s6 = sld [smem:[#allocation18_spill]] (!%p457_p9)  ;;  %s1871_s28 = sand.u32 (!%p457_p9), 1, %s1569_s21  }
  0x1c   : > { %s1972_s4 = sld [smem:[#allocation16_spill]] (!%p457_p9) }
  0x1d   : > { %s1973_s5 = sld [smem:[#allocation17_spill]] (!%p457_p9) }
  0x1e   : > { %vm523_vm0 = vcmask 253952   ;;  %vm524_vm1 = vsmask.f32 256  ;;  %vm520_vm2 = vcmask 257024   ;;  %v526_v1 = vld [vmem:[#allocation2 + $0x10] sm:$0x1] }
  0x1f   : > { %vm525_vm3 = vmand %vm523_vm0, %vm524_vm1  ;;  %v1461_v2 = vld [vmem:[%s1968_s2 + $0x28] sm:$0xff]   ;;  %s1724_s18 = scalar_select %p511_p10, %s1692_s11, 1  ;;  %v1579_v4 = vmov 0.0   ;;  %v1462_v5 = vld [vmem:[%s1968_s2 + $0x20] sm:$0xff]   ;;  %v1580_v6 = vmov 0   ;;  %vm559_vm4 = vcmask 1042432  }
  0x20   : > { %v527_v3 = vsel %vm525_vm3, 0, %v526_v1  ;;  %1363 = vmatprep.subr.bf16.mxu0 %v1579_v4  ;;  %1379 = vmatprep.subr.bf16.mxu1 %v1579_v4  ;;  %522 = vst.msk [vmem:[#allocation2 + $0x4] sm:$0xf] %vm520_vm2, %v1580_v6  ;;  %v1463_v7 = vld [vmem:[%s1968_s2 + $0x18] sm:$0xff]   ;;  %v1464_v11 = vld [vmem:[%s1968_s2 + $0x10] sm:$0xff]   ;;  %v1465_v16 = vld [vmem:[%s1968_s2 + $0x8] sm:$0xff]  }
  0x21   : > { %528 = vst [vmem:[#allocation2 + $0x10] sm:$0x1] %v527_v3  ;;  %1364 = vmatpush3.bf16.msra.mxu0 %v1461_v2  ;;  %s1339_s26 = sshll.u32 %s1724_s18, 3  ;;  %1457 = vset.pattern.permute.xlu1 %v1580_v6  ;;  %v1466_v23 = vld [vmem:[%s1968_s2] sm:$0xff]   ;;  %vm1582_vm5 = vmmov 0   ;;  %vm567_vm6 = vcmask 261120  }
  0x22   : > { %1365 = vmatprep.subr.bf16.mxu0 %v1579_v4  ;;  %s515_s17 = scalar_lea.vmem %s1969_s0, %s1339_s26  ;;  %1458 = vset.pattern.permute.xlu0 %v1580_v6  ;;  %vm573_vm7 = vcmask 523264   ;;  %vm597_vm8 = vsmask.f32 4352  ;;  %vm649_vm9 = vcmask 785408   ;;  %v1304_v46 = vld [vmem:[%s1970_s3] ss:$0 sm:$0xff] }
  0x23   : > { %v529_v8 = vld [vmem:[%s515_s17] sm:$0xf]  ;;  %v530_v9 = vld [vmem:[%s515_s17 + $0x4] sm:$0xf]  ;;  %1375 = vmatprep.mubr.msk.bf16.mxu0 %vm1582_vm5, %v1579_v4  ;;  %1391 = vmatprep.mubr.msk.bf16.mxu1 %vm1582_vm5, %v1579_v4  ;;  %s1583_s17 = smov 32   ;;  %v1469_v3 = vld [vmem:[%s1971_s6 + $0x28] sm:$0xff]  }
  0x24   : > { %531 = vst.msk [vmem:[#allocation2 + $0x8] sm:$0xf] %vm520_vm2, %v529_v8  ;;  %532 = vst.msk [vmem:[#allocation2 + $0xc] sm:$0xf] %vm520_vm2, %v530_v9  ;;  %1380 = vmatpush3.bf16.msra.mxu1 %v1469_v3  ;;  %v1471_v6 = vld [vmem:[%s1971_s6 + $0x18] sm:$0xff]   ;;  %s1974_s1 = sld [smem:[#allocation13_spill]] }
  0x25   : > { %1366 = vmatpush3.bf16.msra.mxu0 %v1462_v5  ;;  %v1470_v5 = vld [vmem:[%s1971_s6 + $0x20] sm:$0xff]   ;;  %1381 = vmatprep.subr.bf16.mxu1 %v1579_v4  ;;  %vm1070_vm10 = vcmask 130048   ;;  %s1297_s0 = sshll.u32 %s1871_s28, 5  ;;  %s1342_s26 = sshll.u32 %s1692_s11, 9 }
  0x26   : > { %1367 = vmatprep.subr.bf16.mxu0 %v1579_v4 }
  0x27   : > { %v533_v25 = vld [vmem:[#allocation2 + $0x4] sm:$0x8] }
  0x28   : > { %v1460_v10 = vld [vmem:[#allocation2 + $0x10] ss:$0 sps:$4 sm:$0x11]   ;;  %1382 = vmatpush3.bf16.msra.mxu1 %v1470_v5 }
  0x29   : > { %1368 = vmatpush3.bf16.msra.mxu0 %v1463_v7  ;;  %v561_v15 = vrot.slane %v1460_v10, 5  ;;  %1383 = vmatprep.subr.bf16.mxu1 %v1579_v4 }
  0x2a   : > { %1369 = vmatprep.subr.bf16.mxu0 %v1579_v4  ;;  %s518_s22 = scalar_lea.vmem %s1974_s1, %s1724_s18  ;;  %s510_s18 = scalar_lea.vmem [#allocation6], %s1297_s0 }
  0x2b   : > { %v534_v12 = vld [vmem:[#allocation2 + $0x8] sm:$0xf]  ;;  %v535_v13 = vld [vmem:[#allocation2 + $0xc] sm:$0xf]  ;;  %s1194_s2 = sshll.u32 %s510_s18, 4  ;;  %s1875_s2 = int_to_ptr.vmem [resolvable:$true] %s1194_s2 }
  0x2c   : > { %v1302_v14 = vcombine.low %v534_v12, %v535_v13  ;;  %v1301_v26 = vcombine.low %v535_v13, %v535_v13  ;;  %v1300_v29 = vcombine.low %v533_v25, %v534_v12  ;;  %1384 = vmatpush3.bf16.msra.mxu1 %v1471_v6  ;;  %v1472_v25 = vld [vmem:[%s1971_s6 + $0x10] sm:$0xff]   ;;  %s1487_s24 = scalar_lea.vmem %s1875_s2, 512 }
  0x2d   : > { %1370 = vmatpush3.bf16.msra.mxu0 %v1464_v11  ;;  %1385 = vmatprep.subr.bf16.mxu1 %v1579_v4  ;;  %p1488_p11 = scmp.ne.s32.totalorder %s1875_s2, %s1487_s24 }
  0x2e   : > { %1371 = vmatprep.subr.bf16.mxu0 %v1579_v4  ;;  %v547_v17 = vshrl.u32 %v1302_v14, 16  ;;  %v550_v18 = vshll.u32 %v1302_v14, 16  ;;  %v560_v19 = vrot.slane %v1302_v14, 5  ;;  %v1312_v14 = vld [vmem:[%s1972_s4] ss:$0 sm:$0xff] }
  0x2f   : > { %p1489_p12 = pnand %p1488_p11, %p1709_p5 }
  0x30   : > { %v549_v20 = vrot.slane %v547_v17, 4  ;;  %v552_v21 = vrot.slane %v550_v18, 5  ;;  %v562_v22 = vsel %vm559_vm4, %v560_v19, %v561_v15  ;;  %1386 = vmatpush3.bf16.msra.mxu1 %v1472_v25  ;;  %v1092_v25 = vld [vmem:[%s1952_s12 + $0x18] sm:$0xff] }
  0x31   : > { %1372 = vmatpush3.bf16.msra.mxu0 %v1465_v16  ;;  %565 = vrot.lane.b32.xlu1 %v562_v22, %s1581_s16  ;;  %v1313_v16 = vld [vmem:[%s1973_s5] ss:$0 sm:$0xff]  ;;  %p1490_p13 = pneg %p1489_p12 }
  0x32   : > { %1373 = vmatprep.subr.bf16.mxu0 %v1579_v4  ;;  %v553_v24 = vor.u32 %v552_v21, %v549_v20  ;;  %1387 = vmatprep.subr.bf16.mxu1 %v1579_v4 }
  0x34   : > { %554 = vrot.lane.b32.xlu0 %v553_v24, %s1583_s17 }
  0x35   : > { %1374 = vmatpush3.bf16.msra.mxu0 %v1466_v23 }
  0x38   : > { %563 = vrot.lane.b32.xlu0 %v560_v19, %s1581_s16 }
  0xa3   : > { %v566_v27 = vpop.permute.xlu1 %565 }
  0xa6   : > { %v555_v28 = vpop.permute.xlu0 %554 }
  0xa7   : > { %v572_v30 = vsel %vm567_vm6, %v1301_v26, %v555_v28  ;;  %v570_v34 = vsel %vm567_vm6, %v1300_v29, %v555_v28  ;;  %v1475_v26 = vld [vmem:[%s1971_s6 + $0x8] sm:$0xff]  }
  0xa8   : > { %v577_v31 = vsel %vm573_vm7, %v572_v30, %v566_v27  ;;  %1388 = vmatpush3.bf16.msra.mxu1 %v1475_v26  ;;  %v1468_v27 = vld [vmem:[#allocation2 + $0x10] ss:$0 sps:$4 sm:$0x11]   ;;  %v1476_v30 = vld [vmem:[%s1971_s6] sm:$0xff]  }
  0xa9   : > { %v605_v32 = vshrl.u32 %v577_v31, 16  ;;  %v608_v33 = vshll.u32 %v577_v31, 16  ;;  %1389 = vmatprep.subr.bf16.mxu1 %v1579_v4  ;;  %v1121_v26 = vld [vmem:[%s1953_s13] sm:$0xff] }
  0xaa   : > { %v564_v35 = vpop.permute.xlu0 %563 }
  0xab   : > { %v575_v36 = vsel %vm573_vm7, %v570_v34, %v564_v35  ;;  %v607_v37 = vrot.slane %v605_v32, 3  ;;  %v610_v38 = vrot.slane %v608_v33, 4  ;;  %v778_v35 = vrot.slane %v1468_v27, 5  ;;  %v1122_v27 = vld [vmem:[%s1953_s13 + $0x8] sm:$0xff] }
  0xac   : > { %v598_v39 = vshrl.u32 %v575_v36, 16  ;;  %v601_v40 = vshll.u32 %v575_v36, 16  ;;  %1390 = vmatpush3.bf16.msra.mxu1 %v1476_v30 }
  0xad   : > { %v611_v43 = vor.u32 %v610_v38, %v607_v37 }
  0xae   : > { %v600_v41 = vrot.slane %v598_v39, 3  ;;  %v603_v42 = vrot.slane %v601_v40, 4  ;;  %v751_v40 = vld [vmem:[#allocation2 + $0x4] sm:$0x8] }
  0xb0   : > { %v604_v44 = vor.u32 %v603_v42, %v600_v41 }
  0xb2   : > { %v612_v45 = vsel %vm597_vm8, %v604_v44, %v611_v43 }
  0xb3   : > { %1376 = vmatmul.mubr.msk.bf16.vlgmr.msra.gmra.mxu0 %vm649_vm9, %v612_v45 }
 0x173   : > { %v687_v47 = vpop.f32.mrf.mxu0 }
 0x174   : > { %v688_v48 = vadd.f32 %v1304_v46, %v687_v47 }
 0x175   : > { %v1377_v49 = vpop.f32.mrf.mxu0 }
 0x176   : > { %v694_v50 = vmax.f32 %v688_v48, 0.0 }
 0x177   : > { %v690_v51 = vpop.f32.mrf.mxu0 }
 0x178   : > { %v691_v52 = vadd.f32 %v1304_v46, %v690_v51  ;;  %v696_v53 = vsel %vm567_vm6, %v694_v50, 0.0 }
 0x179   : > { %697 = vadd.xlane.f32.xlu1 %v696_v53  ;;  %v1378_v54 = vpop.f32.mrf.mxu0 }
 0x17a   : > { %v695_v55 = vmax.f32 %v691_v52, 0.0 }
 0x17c   : > { %v699_v56 = vsel %vm567_vm6, %v695_v55, 0.0 }
 0x17d   : > { %700 = vadd.xlane.f32.xlu0 %v699_v56 }
 0x202   : > { %v698_v57 = vpop.xlane.xlu1 %697 }
 0x203   : > { %v703_v58 = vmul.f32 0.03125, %v698_v57 }
 0x205   : > { %v705_v59 = vsub.f32 %v694_v50, %v703_v58 }
 0x206   : > { %v701_v60 = vpop.xlane.xlu0 %700 }
 0x207   : > { %v704_v61 = vmul.f32 0.03125, %v701_v60  ;;  %v707_v62 = vmul.f32 %v705_v59, %v705_v59  ;;  %v1320_v60 = vld [vmem:[%s1947_s7] ss:$0 sm:$0xff] }
 0x209   : > { %v706_v63 = vsub.f32 %v695_v55, %v704_v61  ;;  %v709_v0 = vsel %vm567_vm6, %v707_v62, 0.0 }
 0x20a   : > { %710 = vadd.xlane.f32.xlu0 %v709_v0 }
 0x20b   : > { %v708_v1 = vmul.f32 %v706_v63, %v706_v63 }
 0x20d   : > { %v712_v2 = vsel %vm567_vm6, %v708_v1, 0.0 }
 0x20e   : > { %713 = vadd.xlane.f32.xlu1 %v712_v2 }
 0x293   : > { %v711_v7 = vpop.xlane.xlu0 %710 }
 0x294   : > { %v715_v8 = vmul.f32 0.03125, %v711_v7 }
 0x296   : > { %v717_v9 = vadd.f32 1e-05, %v715_v8 }
 0x297   : > { %v714_v10 = vpop.xlane.xlu1 %713 }
 0x298   : > { %1477 = vrsqrt.f32 %v717_v9  ;;  %v716_v11 = vmul.f32 0.03125, %v714_v10 }
 0x29a   : > { %v718_v12 = vadd.f32 1e-05, %v716_v11 }
 0x29c   : > { %1479 = vrsqrt.f32 %v718_v12 }
 0x2a5   : > { %v1478_v13 = vpop.eup %1477 }
 0x2a6   : > { %v721_v15 = vmul.f32 %v1478_v13, %v705_v59 }
 0x2a8   : > { %v730_v17 = vmul.f32 %v1312_v14, %v721_v15 }
 0x2a9   : > { %v1480_v18 = vpop.eup %1479 }
 0x2aa   : > { %v739_v19 = vadd.f32 %v1313_v16, %v730_v17  ;;  %v722_v20 = vmul.f32 %v1480_v18, %v706_v63  ;;  %v956_v18 = vld [vmem:[%s1950_s10 + $0x18] sm:$0xff] }
 0x2ab   : > { %1395 = vmatprep.subr.mxu0 %v956_v18 }
 0x2ac   : > { %v1340_v21 = vpack.c.bf16 %v739_v19, %v739_v19  ;;  %v731_v22 = vmul.f32 %v1312_v14, %v722_v20  ;;  %v955_v19 = vld [vmem:[%s1950_s10 + $0x10] sm:$0xff]  ;;  %1396 = vmatpush3.msra.mxu0 %v956_v18  ;;  %v954_v20 = vld [vmem:[%s1950_s10 + $0x8] sm:$0xff] }
 0x2ad   : > { %1397 = vmatprep.subr.mxu0 %v955_v19 }
 0x2ae   : > { %749 = vst.msk [vmem:[#allocation2 + $0x8] sm:$0xf] %vm520_vm2, %v1340_v21  ;;  %v740_v23 = vadd.f32 %v1313_v16, %v731_v22  ;;  %1398 = vmatpush3.msra.mxu0 %v955_v19  ;;  %v953_v21 = vld [vmem:[%s1950_s10] sm:$0xff]  ;;  %v1074_v22 = vld [vmem:[#allocation3] sm:$0x1] }
 0x2af   : > { %1399 = vmatprep.subr.mxu0 %v954_v20 }
 0x2b0   : > { %v1341_v24 = vpack.c.bf16 %v740_v23, %v740_v23  ;;  %1400 = vmatpush3.msra.mxu0 %v954_v20  ;;  %v1090_v23 = vld [vmem:[%s1952_s12 + $0x8] sm:$0xff] }
 0x2b1   : > { %1401 = vmatprep.subr.mxu0 %v953_v21 }
 0x2b2   : > { %750 = vst.msk [vmem:[#allocation2 + $0xc] sm:$0xf] %vm520_vm2, %v1341_v24  ;;  %1402 = vmatpush3.msra.mxu0 %v953_v21  ;;  %v1091_v24 = vld [vmem:[%s1952_s12 + $0x10] sm:$0xff] }
 0x2b5   : > { %v752_v28 = vld [vmem:[#allocation2 + $0x8] sm:$0xf] }
 0x2b6   : > { %v1316_v42 = vcombine.low %v751_v40, %v752_v28 }
 0x2b9   : > { %v753_v29 = vld [vmem:[#allocation2 + $0xc] sm:$0xf] }
 0x2ba   : > { %v1318_v31 = vcombine.low %v752_v28, %v753_v29  ;;  %v1317_v41 = vcombine.low %v753_v29, %v753_v29  ;;  %v1123_v28 = vld [vmem:[%s1953_s13 + $0x10] sm:$0xff]  ;;  %v1124_v29 = vld [vmem:[%s1953_s13 + $0x18] sm:$0xff] }
 0x2bc   : > { %v777_v32 = vrot.slane %v1318_v31, 5  ;;  %v765_v33 = vshrl.u32 %v1318_v31, 16  ;;  %v768_v34 = vshll.u32 %v1318_v31, 16 }
 0x2be   : > { %780 = vrot.lane.b32.xlu1 %v777_v32, %s1581_s16  ;;  %v767_v36 = vrot.slane %v765_v33, 4  ;;  %v770_v37 = vrot.slane %v768_v34, 5  ;;  %v779_v39 = vsel %vm559_vm4, %v777_v32, %v778_v35 }
 0x2c0   : > { %v771_v38 = vor.u32 %v770_v37, %v767_v36  ;;  %v1328_v37 = vld [vmem:[%s1948_s8] ss:$0 sm:$0xff] }
 0x2c2   : > { %782 = vrot.lane.b32.xlu1 %v779_v39, %s1581_s16  ;;  %772 = vrot.lane.b32.xlu0 %v771_v38, %s1583_s17  ;;  %v1329_v39 = vld [vmem:[%s1949_s9] ss:$0 sm:$0xff]  ;;  %s1880_s17 = scalar_lea.hbm %s1955_s15, %s1342_s26 }
 0x330   : > { %v781_v4 = vpop.permute.xlu1 %780 }
 0x334   : > { %v783_v43 = vpop.permute.xlu1 %782  ;;  %v773_v44 = vpop.permute.xlu0 %772 }
 0x335   : > { %v786_v45 = vsel %vm567_vm6, %v1316_v42, %v773_v44  ;;  %v788_v46 = vsel %vm567_vm6, %v1317_v41, %v773_v44 }
 0x336   : > { %v790_v47 = vsel %vm573_vm7, %v786_v45, %v781_v4  ;;  %v792_v48 = vsel %vm573_vm7, %v788_v46, %v783_v43  ;;  %v1089_v45 = vld [vmem:[%s1952_s12] sm:$0xff] }
 0x337   : > { %v812_v49 = vshrl.u32 %v790_v47, 16  ;;  %v815_v50 = vshll.u32 %v790_v47, 16  ;;  %v819_v51 = vshrl.u32 %v792_v48, 16  ;;  %v822_v52 = vshll.u32 %v792_v48, 16 }
 0x339   : > { %v814_v53 = vrot.slane %v812_v49, 3  ;;  %v817_v54 = vrot.slane %v815_v50, 4  ;;  %v821_v55 = vrot.slane %v819_v51, 3  ;;  %v824_v56 = vrot.slane %v822_v52, 4 }
 0x33b   : > { %v818_v57 = vor.u32 %v817_v54, %v814_v53  ;;  %v825_v58 = vor.u32 %v824_v56, %v821_v55  ;;  %v1080_v54 = vlaneseq }
 0x33d   : > { %v826_v59 = vsel %vm597_vm8, %v818_v57, %v825_v58  ;;  %v1081_v56 = vshrl.u32 %v1080_v54, 7 }
 0x33e   : > { %1392 = vmatmul.mubr.msk.bf16.vlgmr.msra.gmra.mxu1 %vm649_vm9, %v826_v59  ;;  %v1072_v59 = vld [vmem:[%s518_s22] sm:$0x1]  ;;  %s1584_s22 = smov [#allocation6]  }
 0x33f   : > { %v1082_v58 = vsub.s32 0, %v1081_v56  ;;  %s1491_s0 = sshll.u32 %s1584_s22, 4  ;;  %s1492_s0 = int_to_ptr.vmem [resolvable:$false] %s1491_s0 }
 0x340   : > { %s1493_s1 = scalar_lea.vmem %s1492_s0, 1024  ;;  %p1494_p0 = scmp.lt.s32.totalorder %s1875_s2, %s1492_s0 }
 0x341   : > { %p1495_p1 = scmp.lt.s32.totalorder %s1493_s1, %s1487_s24 }
 0x343   : > { %p1496_p2 = por %p1495_p1, %p1494_p0 }
 0x345   : > { %p1497_p3 = pnand %p1496_p2, %p1490_p13 }
 0x3fe   : > { %v900_v61 = vpop.f32.mrf.mxu1 }
 0x3ff   : > { %v901_v62 = vadd.f32 %v1320_v60, %v900_v61 }
 0x400   : > { %v1393_v63 = vpop.f32.mrf.mxu1 }
 0x401   : > { %v907_v0 = vmax.f32 %v901_v62, 0.0 }
 0x402   : > { %v903_v1 = vpop.f32.mrf.mxu1 }
 0x403   : > { %v904_v2 = vadd.f32 %v1320_v60, %v903_v1  ;;  %v909_v3 = vsel %vm567_vm6, %v907_v0, 0.0 }
 0x404   : > { %910 = vadd.xlane.f32.xlu0 %v909_v3  ;;  %v1394_v5 = vpop.f32.mrf.mxu1 }
 0x405   : > { %v908_v6 = vmax.f32 %v904_v2, 0.0  ;;  %v1153_v5 = vrot.slane %v1072_v59, %v1082_v58 }
 0x407   : > { %v912_v7 = vsel %vm567_vm6, %v908_v6, 0.0 }
 0x408   : > { %913 = vadd.xlane.f32.xlu1 %v912_v7 }
 0x419   : > { %1077 = vperm.xlu1 %1457, %v1074_v22  }
 0x41d   : > { %1100 = vperm.xlu1 %1457, %v1090_v23  }
 0x421   : > { %1105 = vperm.xlu1 %1457, %v1091_v24  }
 0x425   : > { %1110 = vperm.xlu1 %1457, %v1092_v25  }
 0x429   : > { %1127 = vperm.xlu1 %1457, %v1121_v26  }
 0x42d   : > { %1132 = vperm.xlu1 %1457, %v1122_v27  }
 0x431   : > { %1137 = vperm.xlu1 %1457, %v1123_v28  }
 0x435   : > { %1142 = vperm.xlu1 %1457, %v1124_v29  }
 0x48d   : > { %v911_v8 = vpop.xlane.xlu0 %910 }
 0x48e   : > { %v915_v9 = vmul.f32 0.03125, %v911_v8 }
 0x490   : > { %v917_v10 = vsub.f32 %v907_v0, %v915_v9 }
 0x491   : > { %v914_v11 = vpop.xlane.xlu1 %913 }
 0x492   : > { %v916_v12 = vmul.f32 0.03125, %v914_v11  ;;  %v919_v13 = vmul.f32 %v917_v10, %v917_v10 }
 0x494   : > { %v918_v14 = vsub.f32 %v908_v6, %v916_v12  ;;  %v921_v15 = vsel %vm567_vm6, %v919_v13, 0.0 }
 0x495   : > { %922 = vadd.xlane.f32.xlu0 %v921_v15  ;;  %v1078_v48 = vpop.permute.xlu1 %1077 }
 0x496   : > { %v920_v16 = vmul.f32 %v918_v14, %v918_v14  ;;  %v1083_v62 = vrot.slane %v1078_v48, %v1082_v58 }
 0x498   : > { %v924_v17 = vsel %vm567_vm6, %v920_v16, 0.0 }
 0x499   : > { %925 = vadd.xlane.f32.xlu0 %v924_v17  ;;  %v1101_v49 = vpop.permute.xlu1 %1100 }
 0x49d   : > { %v1106_v50 = vpop.permute.xlu1 %1105 }
 0x4a1   : > { %v1111_v51 = vpop.permute.xlu1 %1110 }
 0x4a5   : > { %v1128_v52 = vpop.permute.xlu1 %1127 }
 0x4a9   : > { %v1133_v53 = vpop.permute.xlu1 %1132 }
 0x4ad   : > { %v1138_v55 = vpop.permute.xlu1 %1137 }
 0x4af   : > { %1095 = vperm.xlu0 %1458, %v1089_v45  }
 0x4b1   : > { %v1143_v57 = vpop.permute.xlu1 %1142 }
 0x51e   : > { %v923_v30 = vpop.xlane.xlu0 %922 }
 0x51f   : > { %v927_v31 = vmul.f32 0.03125, %v923_v30 }
 0x521   : > { %v929_v32 = vadd.f32 1e-05, %v927_v31 }
 0x522   : > { %v926_v33 = vpop.xlane.xlu0 %925 }
 0x523   : > { %1481 = vrsqrt.f32 %v929_v32  ;;  %v928_v34 = vmul.f32 0.03125, %v926_v33 }
 0x525   : > { %v930_v35 = vadd.f32 1e-05, %v928_v34 }
 0x527   : > { %1483 = vrsqrt.f32 %v930_v35 }
 0x52a   : > { %v1096_v3 = vpop.permute.xlu0 %1095 }
 0x530   : > { %v1482_v36 = vpop.eup %1481 }
 0x531   : > { %v933_v38 = vmul.f32 %v1482_v36, %v917_v10 }
 0x533   : > { %v942_v4 = vmul.f32 %v1328_v37, %v933_v38 }
 0x534   : > { %v1484_v40 = vpop.eup %1483 }
 0x535   : > { %v934_v41 = vmul.f32 %v1484_v40, %v918_v14  ;;  %v951_v42 = vadd.f32 %v1329_v39, %v942_v4 }
 0x537   : > { %v943_v43 = vmul.f32 %v1328_v37, %v934_v41  ;;  %1403 = vmatprep.mubr.msk.f32.mxu0 %vm567_vm6, %v951_v42 }
 0x539   : > { %v952_v44 = vadd.f32 %v1329_v39, %v943_v43 }
 0x53b   : > { %1404 = vmatmul.mubr.msk.f32.vlgmr.msra.gmra.mxu0 %vm567_vm6, %v952_v44 }
 0x5fb   : > { %v1405_v46 = vpop.f32.mrf.mxu0 }
 0x5fd   : > { %v1029_v47 = vpop.f32.mrf.mxu0 }
 0x5fe   : > { %1038 = vxpose.xlu1.b32.start [1/2] (short) (narrow) %v1029_v47, 8 }
 0x602   : > { %1039 = vxpose.xlu1.b32.end [2/2] (short) (narrow) %v1405_v46, 8 }
 0x67a   : > { %v1054_v60 = vpop.trf.xlu1 }
 0x67b   : > { %v1071_v61 = vsel %vm1070_vm10, %v1054_v60, 0.0 }
 0x67c   : > { %v1073_v63 = vmul.f32 %v1072_v59, %v1071_v61 }
 0x67e   : > { %v1084_v0 = vadd.f32 %v1083_v62, %v1073_v63 }
 0x680   : > { %v1085_v1 = vmul.f32 1.442695, %v1084_v0  ;;  %v1116_v2 = vrot.slane %v1084_v0, %v1082_v58 }
 0x682   : > { %1485 = vpow2.f32 %v1085_v1  ;;  %v1118_v6 = vmul.f32 %v1116_v2, %v1101_v49  ;;  %v1119_v7 = vmul.f32 %v1116_v2, %v1106_v50  ;;  %v1120_v8 = vmul.f32 %v1116_v2, %v1111_v51 }
 0x683   : > { %v1117_v9 = vmul.f32 %v1116_v2, %v1096_v3 }
 0x684   : > { %v1146_v10 = vadd.f32 %v1133_v53, %v1118_v6  ;;  %v1147_v11 = vadd.f32 %v1138_v55, %v1119_v7  ;;  %v1148_v12 = vadd.f32 %v1143_v57, %v1120_v8 }
 0x685   : > { %v1145_v13 = vadd.f32 %v1128_v52, %v1117_v9 }
 0x686   : > { %v1156_v14 = vmul.f32 %v1153_v5, %v1146_v10  ;;  %v1157_v15 = vmul.f32 %v1153_v5, %v1147_v11  ;;  %v1158_v16 = vmul.f32 %v1153_v5, %v1148_v12 }
 0x687   : > { %v1155_v17 = vmul.f32 %v1153_v5, %v1145_v13 }
 0x688   : > { %1160 = vst [vmem:[%s510_s18 + $0x8] sm:$0xff] %v1156_v14  ;;  %1161 = vst [vmem:[%s510_s18 + $0x10] sm:$0xff] %v1157_v15 }
 0x689   : > { %1162 = vst [vmem:[%s510_s18 + $0x18] sm:$0xff] %v1158_v16  ;;  %1159 = vst [vmem:[%s510_s18] sm:$0xff] %v1155_v17 }
 0x68a   : > { %1500 = shalt.err (!%p1497_p3)
}
 0x68b   : > { %s1501_s18 = scalar_lea.hbm %s1880_s17, 512  ;;  %s1505_s16 = scalar_lea.hbm %s1955_s15, 1024 }
 0x68c   : > { %p1502_p4 = scmp.ne.s32.totalorder %s1880_s17, %s1501_s18  ;;  %p1506_p9 = scmp.lt.s32.totalorder %s1880_s17, %s1955_s15 }
 0x68d   : > { %p1507_p10 = scmp.lt.s32.totalorder %s1505_s16, %s1501_s18 }
 0x68e   : > { %p1503_p7 = pnand %p1502_p4, %p1709_p5 }
 0x68f   : > { %p1508_p11 = por %p1507_p10, %p1506_p9 }
 0x690   : > { %p1504_p8 = pneg %p1503_p7 }
 0x692   : > { %p1509_p12 = pnand %p1508_p11, %p1504_p8 }
 0x694   : > { %1512 = shalt.err (!%p1509_p12)
}
 0x695   : > { %s1585_s1 = smov 128   ;;  %s1586_s24 = smov 8   ;;  %v1486_v18 = vpop.eup %1485 }
 0x696   : > { %s1975_s0 = scalar_lea.sflag [#allocation7], %s1871_s28  ;;  %s1334_s26 = sshll.u32 %s1692_s11, 4  ;;  %v1332_v19 = vadd.f32 -1.0, %v1486_v18 }
 0x697   : > { %1407 = dma.vmem_to_hbm [thread:$0]  (%p1709_p5), %s1875_s2, 512, %s1880_s17, %s1975_s0, %s1585_s1, %s1585_s1, %s1586_s24  }
 0x698   : > { %s503_s19 = scalar_lea.vmem [#allocation4], %s1871_s28  ;;  %s1179_s22 = scalar_lea.hbm %s1954_s14, %s1334_s26 }
 0x699   : > { %s1181_s27 = sshll.u32 %s503_s19, 4  ;;  %1088 = vst [vmem:[%s503_s19] sm:$0x1] %v1332_v19  ;;  %s1164_s3 = scalar_lea.sflag [#allocation5], %s1871_s28  ;;  %s1182_s27 = int_to_ptr.vmem [resolvable:$true] %s1181_s27 }
 0x69a   : > { %s1513_s4 = scalar_lea.vmem %s1182_s27, 16  ;;  %s1587_s5 = smov [#allocation4]  }
 0x69b   : > { %p1514_p13 = scmp.ne.s32.totalorder %s1182_s27, %s1513_s4  ;;  %s1517_s6 = sshll.u32 %s1587_s5, 4  ;;  %s1518_s6 = int_to_ptr.vmem [resolvable:$false] %s1517_s6 }
 0x69c   : > { %s1519_s11 = scalar_lea.vmem %s1518_s6, 32  ;;  %p1520_p2 = scmp.lt.s32.totalorder %s1182_s27, %s1518_s6 }
 0x69d   : > { %p1515_p0 = pnand %p1514_p13, %p1709_p5  ;;  %p1521_p3 = scmp.lt.s32.totalorder %s1519_s11, %s1513_s4 }
 0x69f   : > { %p1516_p1 = pneg %p1515_p0  ;;  %p1522_p4 = por %p1521_p3, %p1520_p2 }
 0x6a1   : > { %p1523_p7 = pnand %p1522_p4, %p1516_p1 }
 0x6a3   : > { %1526 = shalt.err (!%p1523_p7)
}
 0x6a4   : > { %s1527_s2 = scalar_lea.hbm %s1179_s22, 16  ;;  %s1531_s1 = scalar_lea.hbm %s1954_s14, 32 }
 0x6a5   : > { %p1528_p8 = scmp.ne.s32.totalorder %s1179_s22, %s1527_s2  ;;  %p1532_p11 = scmp.lt.s32.totalorder %s1179_s22, %s1954_s14 }
 0x6a6   : > { %p1533_p12 = scmp.lt.s32.totalorder %s1531_s1, %s1527_s2 }
 0x6a7   : > { %p1529_p9 = pnand %p1528_p8, %p1709_p5 }
 0x6a8   : > { %p1534_p13 = por %p1533_p12, %p1532_p11 }
 0x6a9   : > { %p1530_p10 = pneg %p1529_p9 }
 0x6ab   : > { %p1535_p0 = pnand %p1534_p13, %p1530_p10 }
 0x6ad   : > { %1538 = shalt.err (!%p1535_p0)
}
 0x6ae   : > { %1406 = dma.vmem_to_hbm [thread:$0]  (%p1709_p5), %s1182_s27, 16, %s1179_s22, %s1164_s3  }
 0x6af PF: > { %p1417_p1 = scmp.ge.s32.totalorder %s1577_s23, 2  ;;  %s1209_s4 = sand.u32 1, %s1565_s20  }
 0x6b0   : > { %s1210_s5 = scalar_lea.sflag [#allocation5], %s1209_s4 }
 0x6b1   : > { %p1411_p2 = pnand %p1417_p1, %p1713_p6 }
 0x6b3   : > { %p1412_p3 = pneg %p1411_p2 }
 0x6b5   : > { %1556 = dma.done.wait (%p1412_p3), %s1210_s5, 16  }
 0x6b6   : > { %1558 = vsyncadd (%p1412_p3), %s1210_s5, 4294967280  ;;  %s1218_s6 = scalar_lea.sflag [#allocation7], %s1209_s4 }
 0x6b7   : > { %1560 = dma.done.wait (%p1412_p3), %s1218_s6, 512  }
 0x6b8   : > { %1562 = vsyncadd (%p1412_p3), %s1218_s6, 4294966784  ;;  %s1976_s26 = sld [smem:[#allocation10_spill]]  ;;  %p31_p5 = scmp.ge.s32.totalorder %s1696_s25, 4  }
 0x6b9   : > { %s1977_s22 = sld [smem:[#allocation11_spill]]  ;;  %s1978_s20 = smov %s1569_s21 }
 0x6ba   : > { %s1980_s23 = smov %s1696_s25  ;;  %33 = sbr.rel (!%p31_p5) target bundleno = 13 (0xd), region = 131 }
 0x6be   : > { %s1979_s21 = smov %s1976_s26 }
 0x6bf   :  { %1223 = vsyncpa [#allocation5], 1 }
 0x6c0   :  { %1225 = vsyncpa [#allocation5 + $0x1], 1 }
 0x6c1   :  { %1226 = vsyncpa [#allocation7], 1 }
 0x6c2   :  { %1228 = vsyncpa [#allocation7 + $0x1], 1 }

</bundles_post_ra>
